<compile_context>
chip_gen: v6e
topology: v6e:2x2x1
jax: 0.10.0
libtpu: 0.0.40
codegen_flags: <defaults>
</compile_context>

<pallas_src>
import functools

import jax
import jax.numpy as jnp
from jax.experimental import pallas as pl
from jax.experimental.pallas import tpu as pltpu


# ---------------------------------------------------------------------------
# Kernel
# ---------------------------------------------------------------------------
def _ce_fused_kernel(*refs, n_scores, weights, ignore_label):
    """One grid step: weighted per-pixel CE on (1, C, tile_p) blocks; accumulate
    lane-dense partial sums / valid counts for this (split, batch) block."""
    score_refs = refs[:n_scores]
    target_ref = refs[n_scores]
    sum_ref = refs[n_scores + 1]
    cnt_ref = refs[n_scores + 2]

    p_idx = pl.program_id(2)

    @pl.when(p_idx == 0)
    def _():
        sum_ref[...] = jnp.zeros_like(sum_ref)
        cnt_ref[...] = jnp.zeros_like(cnt_ref)

    t = target_ref[...]                                   # (1, 1, tile_p) int32
    # Wrapper pads the target with ignore_label, so this is the complete mask
    # (no per-tile pixel-index iota/compare needed).
    valid = t != ignore_label                             # (1, 1, tile_p) bool

    _, C, tile_p = score_refs[0].shape
    # Hoisted one-hot: identical for every head; JAX does not CSE broadcast_in_dim.
    cls = jax.lax.broadcasted_iota(jnp.int32, (1, C, tile_p), 1)
    onehot = cls == t                                     # (1, C, tile_p) bool

    acc = jnp.zeros(t.shape, jnp.float32)
    for w, s_ref in zip(weights, score_refs):
        raw = s_ref[...]                                  # (1, C, tile_p), native dtype
        # Gather x[target] in the native dtype (exact: one nonzero per pixel),
        # only the (1,1,tile_p) result is upcast to f32.
        x_t = jnp.sum(
            jnp.where(onehot, raw, jnp.array(0, dtype=raw.dtype)),
            axis=1, keepdims=True,
        ).astype(jnp.float32)
        # log-sum-exp over the class (sublane) axis in f32; pixels stay lane-dense.
        x = raw.astype(jnp.float32)
        m = jnp.max(x, axis=1, keepdims=True)             # (1, 1, tile_p)
        lse = m + jnp.log(jnp.sum(jnp.exp(x - m), axis=1, keepdims=True))
        acc = acc + w * (lse - x_t)

    # select (not multiply): garbage logits in padded / clamped lanes never reach
    # the accumulators.
    sum_ref[...] += jnp.where(valid, acc, 0.0)
    cnt_ref[...] += jnp.where(valid, 1.0, 0.0)


# ---------------------------------------------------------------------------
# Tiling / VMEM accounting
# ---------------------------------------------------------------------------
def _sublane_tile(dtype):
    """Sublane tile for a dtype: f32 -> 8, bf16/f16 -> 16, int8/fp8 -> 32."""
    return max(8, 32 // jnp.dtype(dtype).itemsize)


def _round_up(x, m):
    return -(-x // m) * m


def _vmem_budget():
    """Generation-aware VMEM limit (v7x has a 64 MiB part, v5e/v6e have 128 MiB)."""
    try:
        cap = int(pltpu.get_tpu_info().vmem_capacity_bytes)
    except Exception:
        cap = 64 * 1024 * 1024                            # conservative fallback
    vmem_limit = min(64 * 1024 * 1024, (cap * 3) // 4)    # 48 MiB on v7x, 64 MiB else
    budget = max(8 * 1024 * 1024, vmem_limit - 6 * 1024 * 1024)  # compiler headroom
    return budget, vmem_limit


def _choose_tile_p(P, C, n_scores, dtype, budget_bytes, max_tile_p):
    """Largest lane-multiple pixel tile whose *real* working set fits the budget:
    sublane-padded double-buffered logits + f32 in-kernel temporaries + target block
    + resident accumulators."""
    itemsize = jnp.dtype(dtype).itemsize
    c_native = _round_up(C, _sublane_tile(dtype))         # sublane-padded C, native dtype
    c_f32 = _round_up(C, 8)                               # sublane-padded C, f32 temps
    bytes_per_lane = (
        n_scores * c_native * itemsize * 2                # streamed logits, double-buffered
        + n_scores * c_f32 * 4 * 2                        # f32 upcast + exp-chain temporaries
        + 8 * 4 * 2                                       # int32 target block (8 sublanes, 2 bufs)
        + 2 * 8 * 4 * 2                                   # two resident f32 accumulators (+wb buf)
    )
    max_tile = (budget_bytes // bytes_per_lane) // 128 * 128
    tile = min(max_tile_p, max_tile, pl.cdiv(P, 128) * 128)
    return max(128, tile)


# ---------------------------------------------------------------------------
# Wrapper
# ---------------------------------------------------------------------------
def cross_entropy_fused(score_list, target, weights, *, ignore_label=-1,
                        max_tile_p=8192):
    """Weighted sum of nn.CrossEntropyLoss(ignore_index=ignore_label) over NCHW logits.

    score_list: list of (N, C, H, W) logits (native dtype kept in HBM).
    target:     (N, H, W) integer labels, ignore_label marks ignored pixels.
    weights:    per-score scalar weights (Python floats).
    """
    n_scores = len(score_list)
    N, C, H, W = score_list[0].shape
    P = H * W

    budget, vmem_limit = _vmem_budget()
    tile_p = _choose_tile_p(P, C, n_scores, score_list[0].dtype, budget, max_tile_p)
    n_p_tiles = pl.cdiv(P, tile_p)

    # Split the pixel (reduction) axis across TensorCores when the batch axis cannot
    # give balanced megacore work (v7x: 2 TCs).  Harmless on 1-TC generations.
    n_splits = 2 if (n_p_tiles >= 2 and N % 2 == 1) else 1
    tps = pl.cdiv(n_p_tiles, n_splits)                    # pixel tiles per split
    need_clamp = tps * n_splits > n_p_tiles               # uneven split -> overflow tiles

    # Contiguous reshape only for the (large) logits — no transpose / cast / pad.
    scores = [s.reshape(N, C, P) for s in score_list]

    # Pad the (small) target with ignore_label so the in-kernel mask is just
    # `t != ignore_label`: covers the ragged pixel tail AND the overflow tiles of an
    # uneven core split (their logits block index is clamped below, targets all ignore).
    P_pad = tps * n_splits * tile_p
    t = target.reshape(N, P).astype(jnp.int32)
    if P_pad != P:
        t = jnp.pad(t, ((0, 0), (0, P_pad - P)), constant_values=ignore_label)
    t = t.reshape(N, 1, P_pad)

    last_blk = n_p_tiles - 1
    if need_clamp:
        def score_map(c, n, p):
            return (n, 0, jnp.minimum(c * tps + p, last_blk))
    else:
        def score_map(c, n, p):
            return (n, 0, c * tps + p)

    def target_map(c, n, p):
        return (n, 0, c * tps + p)

    def out_map(c, n, p):
        return (c * N + n, 0, 0)                          # resident per (split, batch)

    kernel = functools.partial(
        _ce_fused_kernel,
        n_scores=n_scores,
        weights=tuple(float(w) for w in weights),
        ignore_label=ignore_label,
    )

    in_specs = [pl.BlockSpec((1, C, tile_p), score_map) for _ in range(n_scores)]
    in_specs.append(pl.BlockSpec((1, 1, tile_p), target_map))
    out_specs = [
        pl.BlockSpec((1, 1, tile_p), out_map),
        pl.BlockSpec((1, 1, tile_p), out_map),
    ]

    loss_part, cnt_part = pl.pallas_call(
        kernel,
        out_shape=(
            jax.ShapeDtypeStruct((n_splits * N, 1, tile_p), jnp.float32),
            jax.ShapeDtypeStruct((n_splits * N, 1, tile_p), jnp.float32),
        ),
        grid_spec=pltpu.PrefetchScalarGridSpec(
            num_scalar_prefetch=0,
            grid=(n_splits, N, tps),
            in_specs=in_specs,
            out_specs=out_specs,
        ),
        compiler_params=pltpu.CompilerParams(
            dimension_semantics=("parallel", "parallel", "arbitrary"),
            vmem_limit_bytes=vmem_limit,
        ),
    )(*scores, t)

    # Final reduction + mean in the wrapper (per-block f32 partials keep accuracy).
    return jnp.sum(loss_part) / jnp.sum(cnt_part)


def cross_entropy_module_forward(score_list, target, *, ignore_label=-1):
    """Pallas equivalent of CrossEntropy.forward (balance_weights = [0.4, 1.0])."""
    balance_weights = [0.4, 1.0]
    sb_weights = 1.0
    if len(balance_weights) == len(score_list):
        # CE denominators are identical (same target), so the weighted sum of means
        # equals (w0*sum0 + w1*sum1) / count -> one fused kernel pass.
        return cross_entropy_fused(
            score_list, target, balance_weights, ignore_label=ignore_label
        )
    elif len(score_list) == 1:
        return cross_entropy_fused(
            score_list, target, [sb_weights], ignore_label=ignore_label
        )
    else:
        raise ValueError("lengths of prediction and target are not identical!")


# ---------------------------------------------------------------------------
# Pure-JAX reference (sanity check)
# ---------------------------------------------------------------------------
def _reference_ce(score_nchw, target_nhw, ignore_label=-1):
    N, C, H, W = score_nchw.shape
    x = jnp.transpose(score_nchw, (0, 2, 3, 1)).reshape(-1, C).astype(jnp.float32)
    t = target_nhw.reshape(-1).astype(jnp.int32)
    lse = jax.nn.logsumexp(x, axis=-1)
    x_t = jnp.take_along_axis(x, jnp.clip(t, 0, C - 1)[:, None], axis=-1)[:, 0]
    valid = (t != ignore_label).astype(jnp.float32)
    return jnp.sum((lse - x_t) * valid) / jnp.sum(valid)


if __name__ == "__main__":
    key = jax.random.PRNGKey(0)
    k0, k1, k2, k3, k4, k5, k6 = jax.random.split(key, 7)

    # --- Test 1: two-head path, small shapes, default tiling -----------------
    N, C, H, W = 2, 4, 16, 16
    score0 = jax.random.normal(k0, (N, C, H, W), dtype=jnp.float32)
    score1 = jax.random.normal(k1, (N, C, H, W), dtype=jnp.float32)
    target = jax.random.randint(k2, (N, H, W), 0, C, dtype=jnp.int32)
    ignore_mask = jax.random.uniform(k3, (N, H, W)) < 0.1
    target = jnp.where(ignore_mask, -1, target)

    loss = cross_entropy_module_forward([score0, score1], target, ignore_label=-1)
    loss = jax.block_until_ready(loss)
    ref = 0.4 * _reference_ce(score0, target) + 1.0 * _reference_ce(score1, target)
    assert jnp.allclose(loss, ref, rtol=1e-5, atol=1e-5), (loss, ref)

    # --- Test 2: single-head path ---------------------------------------------
    loss1 = cross_entropy_module_forward([score0], target, ignore_label=-1)
    loss1 = jax.block_until_ready(loss1)
    ref1 = _reference_ce(score0, target)
    assert jnp.allclose(loss1, ref1, rtol=1e-5, atol=1e-5), (loss1, ref1)

    # --- Test 3: N=1, ragged pixel tail, forced small tile -> exercises the
    #     core-split (n_splits=2), uneven-split clamp and ignore-padded tail ----
    N2, H2, W2 = 1, 16, 20                                 # P = 320 = 2.5 pixel tiles of 128
    s2a = jax.random.normal(k4, (N2, C, H2, W2), dtype=jnp.float32)
    s2b = jax.random.normal(k5, (N2, C, H2, W2), dtype=jnp.float32)
    t2 = jax.random.randint(k6, (N2, H2, W2), 0, C, dtype=jnp.int32)
    t2 = jnp.where(jax.random.uniform(k3, (N2, H2, W2)) < 0.1, -1, t2)

    loss2 = cross_entropy_fused([s2a, s2b], t2, [0.4, 1.0], ignore_label=-1,
                                max_tile_p=128)
    loss2 = jax.block_until_ready(loss2)
    ref2 = 0.4 * _reference_ce(s2a, t2) + 1.0 * _reference_ce(s2b, t2)
    assert jnp.allclose(loss2, ref2, rtol=1e-5, atol=1e-5), (loss2, ref2)

    # --- Test 4: bf16 logits (native-dtype gather path) ------------------------
    s3a = score0.astype(jnp.bfloat16)
    s3b = score1.astype(jnp.bfloat16)
    loss3 = cross_entropy_module_forward([s3a, s3b], target, ignore_label=-1)
    loss3 = jax.block_until_ready(loss3)
    ref3 = (0.4 * _reference_ce(s3a.astype(jnp.float32), target)
            + 1.0 * _reference_ce(s3b.astype(jnp.float32), target))
    assert jnp.allclose(loss3, ref3, rtol=1e-4, atol=1e-4), (loss3, ref3)

    print("KERNEL_OK")
</pallas_src>

<mosaic_0001>
module attributes {stable_mosaic.version = 11 : i64} {
  func.func @_ce_fused_kernel(%arg0: i32, %arg1: i32, %arg2: i32, %arg3: memref<1x4x256xf32, #tpu.memory_space<vmem>>, %arg4: memref<1x4x256xf32, #tpu.memory_space<vmem>>, %arg5: memref<1x1x256xi32, #tpu.memory_space<vmem>>, %arg6: memref<1x1x256xf32, #tpu.memory_space<vmem>>, %arg7: memref<1x1x256xf32, #tpu.memory_space<vmem>>) attributes {dimension_semantics = [#tpu.dimension_semantics<parallel>, #tpu.dimension_semantics<parallel>, #tpu.dimension_semantics<arbitrary>], iteration_bounds = array<i64: 1, 2, 1>, scalar_prefetch = 0 : i64, scratch_operands = 0 : i64, tpu.core_type = #tpu.core_type<tc>, window_params = [{transform_indices = @transform_0, window_bounds = array<i64: 1, 4, 256>}, {transform_indices = @transform_1, window_bounds = array<i64: 1, 4, 256>}, {transform_indices = @transform_2, window_bounds = array<i64: 1, 1, 256>}, {transform_indices = @transform_3, window_bounds = array<i64: 1, 1, 256>}, {transform_indices = @transform_4, window_bounds = array<i64: 1, 1, 256>}]} {
    %c0_i32 = arith.constant 0 : i32
    %0 = arith.cmpi eq, %arg2, %c0_i32 : i32
    %1 = arith.extui %0 : i1 to i32
    %c0_i32_0 = arith.constant 0 : i32
    %2 = arith.cmpi ne, %1, %c0_i32_0 : i32
    scf.if %2 {
      %cst_34 = arith.constant 0.000000e+00 : f32
      %57 = vector.broadcast %cst_34 : f32 to vector<1x1x256xf32>
      %c0_35 = arith.constant 0 : index
      %c0_36 = arith.constant 0 : index
      %c0_37 = arith.constant 0 : index
      %58 = vector.load %arg6[%c0_35, %c0_36, %c0_37] : memref<1x1x256xf32, #tpu.memory_space<vmem>>, vector<1x1x256xf32>
      tpu.vector_store %arg6[%c0_35, %c0_36, %c0_37], %57 {strides = array<i32>} : memref<1x1x256xf32, #tpu.memory_space<vmem>>, vector<1x1x256xf32>,
      %cst_38 = arith.constant 0.000000e+00 : f32
      %59 = vector.broadcast %cst_38 : f32 to vector<1x1x256xf32>
      %c0_39 = arith.constant 0 : index
      %c0_40 = arith.constant 0 : index
      %c0_41 = arith.constant 0 : index
      %60 = vector.load %arg7[%c0_39, %c0_40, %c0_41] : memref<1x1x256xf32, #tpu.memory_space<vmem>>, vector<1x1x256xf32>
      tpu.vector_store %arg7[%c0_39, %c0_40, %c0_41], %59 {strides = array<i32>} : memref<1x1x256xf32, #tpu.memory_space<vmem>>, vector<1x1x256xf32>,
    } else {
    }
    %c0 = arith.constant 0 : index
    %c0_1 = arith.constant 0 : index
    %c0_2 = arith.constant 0 : index
    %3 = vector.load %arg5[%c0, %c0_1, %c0_2] : memref<1x1x256xi32, #tpu.memory_space<vmem>>, vector<1x1x256xi32>
    %c-1_i32 = arith.constant -1 : i32
    %4 = vector.broadcast %c-1_i32 : i32 to vector<1x1x256xi32>
    %5 = arith.cmpi ne, %3, %4 : vector<1x1x256xi32>
    %6 = tpu.iota {dimensions = array<i32: 1>} : vector<1x4x256xi32>
    %7 = vector.broadcast %3 : vector<1x1x256xi32> to vector<1x4x256xi32>
    %8 = arith.cmpi eq, %6, %7 : vector<1x4x256xi32>
    %cst = arith.constant 0.000000e+00 : f32
    %9 = vector.broadcast %cst : f32 to vector<1x1x256xf32>
    %c0_3 = arith.constant 0 : index
    %c0_4 = arith.constant 0 : index
    %c0_5 = arith.constant 0 : index
    %10 = vector.load %arg3[%c0_3, %c0_4, %c0_5] : memref<1x4x256xf32, #tpu.memory_space<vmem>>, vector<1x4x256xf32>
    %cst_6 = arith.constant 0.000000e+00 : f32
    %11 = vector.broadcast %cst_6 : f32 to vector<1x4x256xf32>
    %12 = arith.select %8, %10, %11 : vector<1x4x256xi1>, vector<1x4x256xf32>
    %cst_7 = arith.constant dense<0.000000e+00> : vector<1x256xf32>
    %13 = vector.multi_reduction <add>, %12, %cst_7 [1] : vector<1x4x256xf32> to vector<1x256xf32>
    %14 = vector.shape_cast %13 : vector<1x256xf32> to vector<1x1x256xf32>
    %cst_8 = arith.constant dense<0xFF800000> : vector<1x256xf32>
    %15 = vector.multi_reduction <maximumf>, %10, %cst_8 [1] : vector<1x4x256xf32> to vector<1x256xf32>
    %16 = vector.shape_cast %15 : vector<1x256xf32> to vector<1x1x256xf32>
    %17 = vector.broadcast %16 : vector<1x1x256xf32> to vector<1x4x256xf32>
    %18 = arith.subf %10, %17 : vector<1x4x256xf32>
    %19 = math.exp %18 : vector<1x4x256xf32>
    %cst_9 = arith.constant dense<0.000000e+00> : vector<1x256xf32>
    %20 = vector.multi_reduction <add>, %19, %cst_9 [1] : vector<1x4x256xf32> to vector<1x256xf32>
    %21 = vector.shape_cast %20 : vector<1x256xf32> to vector<1x1x256xf32>
    %22 = math.log %21 : vector<1x1x256xf32>
    %23 = arith.addf %16, %22 : vector<1x1x256xf32>
    %24 = arith.subf %23, %14 : vector<1x1x256xf32>
    %cst_10 = arith.constant 4.000000e-01 : f32
    %25 = vector.broadcast %cst_10 : f32 to vector<1x1x256xf32>
    %26 = arith.mulf %25, %24 : vector<1x1x256xf32>
    %27 = arith.addf %9, %26 : vector<1x1x256xf32>
    %c0_11 = arith.constant 0 : index
    %c0_12 = arith.constant 0 : index
    %c0_13 = arith.constant 0 : index
    %28 = vector.load %arg4[%c0_11, %c0_12, %c0_13] : memref<1x4x256xf32, #tpu.memory_space<vmem>>, vector<1x4x256xf32>
    %cst_14 = arith.constant 0.000000e+00 : f32
    %29 = vector.broadcast %cst_14 : f32 to vector<1x4x256xf32>
    %30 = arith.select %8, %28, %29 : vector<1x4x256xi1>, vector<1x4x256xf32>
    %cst_15 = arith.constant dense<0.000000e+00> : vector<1x256xf32>
    %31 = vector.multi_reduction <add>, %30, %cst_15 [1] : vector<1x4x256xf32> to vector<1x256xf32>
    %32 = vector.shape_cast %31 : vector<1x256xf32> to vector<1x1x256xf32>
    %cst_16 = arith.constant dense<0xFF800000> : vector<1x256xf32>
    %33 = vector.multi_reduction <maximumf>, %28, %cst_16 [1] : vector<1x4x256xf32> to vector<1x256xf32>
    %34 = vector.shape_cast %33 : vector<1x256xf32> to vector<1x1x256xf32>
    %35 = vector.broadcast %34 : vector<1x1x256xf32> to vector<1x4x256xf32>
    %36 = arith.subf %28, %35 : vector<1x4x256xf32>
    %37 = math.exp %36 : vector<1x4x256xf32>
    %cst_17 = arith.constant dense<0.000000e+00> : vector<1x256xf32>
    %38 = vector.multi_reduction <add>, %37, %cst_17 [1] : vector<1x4x256xf32> to vector<1x256xf32>
    %39 = vector.shape_cast %38 : vector<1x256xf32> to vector<1x1x256xf32>
    %40 = math.log %39 : vector<1x1x256xf32>
    %41 = arith.addf %34, %40 : vector<1x1x256xf32>
    %42 = arith.subf %41, %32 : vector<1x1x256xf32>
    %cst_18 = arith.constant 1.000000e+00 : f32
    %43 = vector.broadcast %cst_18 : f32 to vector<1x1x256xf32>
    %44 = arith.mulf %43, %42 : vector<1x1x256xf32>
    %45 = arith.addf %27, %44 : vector<1x1x256xf32>
    %c0_19 = arith.constant 0 : index
    %c0_20 = arith.constant 0 : index
    %c0_21 = arith.constant 0 : index
    %46 = vector.load %arg6[%c0_19, %c0_20, %c0_21] : memref<1x1x256xf32, #tpu.memory_space<vmem>>, vector<1x1x256xf32>
    %cst_22 = arith.constant 0.000000e+00 : f32
    %47 = vector.broadcast %cst_22 : f32 to vector<1x1x256xf32>
    %48 = arith.select %5, %45, %47 : vector<1x1x256xi1>, vector<1x1x256xf32>
    %49 = arith.addf %46, %48 : vector<1x1x256xf32>
    %c0_23 = arith.constant 0 : index
    %c0_24 = arith.constant 0 : index
    %c0_25 = arith.constant 0 : index
    %50 = vector.load %arg6[%c0_23, %c0_24, %c0_25] : memref<1x1x256xf32, #tpu.memory_space<vmem>>, vector<1x1x256xf32>
    tpu.vector_store %arg6[%c0_23, %c0_24, %c0_25], %49 {strides = array<i32>} : memref<1x1x256xf32, #tpu.memory_space<vmem>>, vector<1x1x256xf32>,
    %c0_26 = arith.constant 0 : index
    %c0_27 = arith.constant 0 : index
    %c0_28 = arith.constant 0 : index
    %51 = vector.load %arg7[%c0_26, %c0_27, %c0_28] : memref<1x1x256xf32, #tpu.memory_space<vmem>>, vector<1x1x256xf32>
    %cst_29 = arith.constant 1.000000e+00 : f32
    %cst_30 = arith.constant 0.000000e+00 : f32
    %52 = vector.broadcast %cst_29 : f32 to vector<1x1x256xf32>
    %53 = vector.broadcast %cst_30 : f32 to vector<1x1x256xf32>
    %54 = arith.select %5, %52, %53 : vector<1x1x256xi1>, vector<1x1x256xf32>
    %55 = arith.addf %51, %54 : vector<1x1x256xf32>
    %c0_31 = arith.constant 0 : index
    %c0_32 = arith.constant 0 : index
    %c0_33 = arith.constant 0 : index
    %56 = vector.load %arg7[%c0_31, %c0_32, %c0_33] : memref<1x1x256xf32, #tpu.memory_space<vmem>>, vector<1x1x256xf32>
    tpu.vector_store %arg7[%c0_31, %c0_32, %c0_33], %55 {strides = array<i32>} : memref<1x1x256xf32, #tpu.memory_space<vmem>>, vector<1x1x256xf32>,
    return
  }
  func.func @transform_0(%arg0: i32, %arg1: i32, %arg2: i32) -> (i32, i32, i32) {
    %c1_i32 = arith.constant 1 : i32
    %0 = arith.muli %arg0, %c1_i32 : i32
    %1 = arith.addi %0, %arg2 : i32
    %c0_i32 = arith.constant 0 : i32
    %c0_i32_0 = arith.constant 0 : i32
    return %arg1, %c0_i32, %1 : i32, i32, i32
  }
  func.func @transform_1(%arg0: i32, %arg1: i32, %arg2: i32) -> (i32, i32, i32) {
    %c1_i32 = arith.constant 1 : i32
    %0 = arith.muli %arg0, %c1_i32 : i32
    %1 = arith.addi %0, %arg2 : i32
    %c0_i32 = arith.constant 0 : i32
    %c0_i32_0 = arith.constant 0 : i32
    return %arg1, %c0_i32, %1 : i32, i32, i32
  }
  func.func @transform_2(%arg0: i32, %arg1: i32, %arg2: i32) -> (i32, i32, i32) {
    %c1_i32 = arith.constant 1 : i32
    %0 = arith.muli %arg0, %c1_i32 : i32
    %1 = arith.addi %0, %arg2 : i32
    %c0_i32 = arith.constant 0 : i32
    %c0_i32_0 = arith.constant 0 : i32
    return %arg1, %c0_i32, %1 : i32, i32, i32
  }
  func.func @transform_3(%arg0: i32, %arg1: i32, %arg2: i32) -> (i32, i32, i32) {
    %c2_i32 = arith.constant 2 : i32
    %0 = arith.muli %arg0, %c2_i32 : i32
    %1 = arith.addi %0, %arg1 : i32
    %c0_i32 = arith.constant 0 : i32
    %c0_i32_0 = arith.constant 0 : i32
    %c0_i32_1 = arith.constant 0 : i32
    return %1, %c0_i32, %c0_i32_0 : i32, i32, i32
  }
  func.func @transform_4(%arg0: i32, %arg1: i32, %arg2: i32) -> (i32, i32, i32) {
    %c2_i32 = arith.constant 2 : i32
    %0 = arith.muli %arg0, %c2_i32 : i32
    %1 = arith.addi %0, %arg1 : i32
    %c0_i32 = arith.constant 0 : i32
    %c0_i32_0 = arith.constant 0 : i32
    %c0_i32_1 = arith.constant 0 : i32
    return %1, %c0_i32, %c0_i32_0 : i32, i32, i32
  }
}

</mosaic_0001>

<bundles_post_ra>
// kernel: tpu_custom_call.1
= control target key start
LH: loop header
LB: loop body
LE: loop exit
PB: predicated region body
PF: predicated region fallthrough
CT: control target
= control target key end

     0   :  { %s1428_s0 = inlined_call_operand.hbm [shape: f32[2,4,256], index: 0, kind: input, shape index: {}]   ;;  %s1429_s1 = inlined_call_operand.hbm [shape: f32[2,4,256], index: 1, kind: input, shape index: {}]   ;;  %s1430_s2 = inlined_call_operand.hbm [shape: s32[2,1,256], index: 2, kind: input, shape index: {}]   ;;  %s1431_s3 = inlined_call_operand.hbm [shape: f32[2,1,256], index: 3, kind: output, shape index: {0}]   ;;  %s1432_s4 = inlined_call_operand.hbm [shape: f32[2,1,256], index: 4, kind: output, shape index: {1}]  }
   0x1   :  { %1434 = sst [smem:[#allocation17_spill]] %s1429_s1 }
   0x2   :  { %10 = vsyncpa [#allocation3], 0 }
   0x3   :  { %12 = vsyncpa [#allocation3 + $0x1], 0 }
   0x4   :  { %13 = vsyncpa [#allocation6], 0 }
   0x5   :  { %15 = vsyncpa [#allocation6 + $0x1], 0 }
   0x6   :  { %16 = vsyncpa [#allocation4], 0 }
   0x7   :  { %18 = vsyncpa [#allocation4 + $0x1], 0 }
   0x8   :  { %19 = vsyncpa [#allocation10], 0 }
   0x9   :  { %21 = vsyncpa [#allocation10 + $0x1], 0  ;;  %s1116_s15 = smov 0   ;;  %s1118_s16 = smov 0  }
   0xa   :  { %s1120_s17 = smov 0   ;;  %s1122_s18 = smov 0  }
   0xb   :  { %s1124_s19 = smov 0   ;;  %s1126_s20 = smov 0  }
   0xc LB: > { %s1147_s21 = sadd.s32 4294967295, %s1082_s20   ;;  %s760_s22 = sadd.s32 4294967294, %s1082_s20   ;;  %s1082_s20 = sphi %s1126_s20, %s27_s20   ;;  %s1078_s19 = sphi %s1124_s19, %s1453_s19   ;;  %s1074_s18 = sphi %s1122_s18, %s1452_s18   ;;  %s1070_s17 = sphi %s1120_s17, %s1451_s17   ;;  %s1066_s16 = sphi %s1118_s16, %s1450_s16   ;;  %s1062_s15 = sphi %s1116_s15, %s1449_s15  }
   0xd   : > { %s42_s23 = sadd.s32 1, %s1078_s19  ;;  %s57_s24 = sadd.s32 1, %s1070_s17 }
   0xe   : > { %p44_p0 = scmp.ge.s32.totalorder %s42_s23, 2  ;;  %p64_p1 = scmp.ne.s32.totalorder %s1070_s17, %s1066_s16 }
   0xf   : > { %p65_p2 = scmp.eq.s32.totalorder %s1082_s20, 0  ;;  %p70_p3 = scmp.ne.s32.totalorder %s1066_s16, %s1062_s15 }
  0x10   : > { %s1455_s23 = smov (%p44_p0, %s42_s23), 0  ;;  %p71_p5 = scmp.eq.s32.totalorder %s1147_s21, 0 }
  0x11   : > { %1435 = sst [smem:[#allocation15_spill]] %s1455_s23  ;;  %p1159_p4 = por %p65_p2, %p64_p1 }
  0x12   : > { %s52_s26 = ssub.s32 %s1078_s19, %s1455_s23  ;;  %p158_p6 = scmp.eq.s32.totalorder %s1147_s21, 1 }
  0x13   : > { %p55_p7 = scmp.eq.s32.totalorder %s52_s26, 0  ;;  %p1167_p8 = por %p71_p5, %p70_p3 }
  0x14   : > { %p1171_p9 = por %p158_p6, %p64_p1  ;;  %p164_p10 = scmp.eq.s32.totalorder %s760_s22, 1 }
  0x15   : > { %s1176_s29 = scalar_select %p55_p7, %s1070_s17, %s57_s24  }
  0x16   : > { %p1178_p11 = por %p164_p10, %p70_p3  ;;  %p818_p13 = scmp.lt.s32.totalorder %s1082_s20, 2 }
  0x17   : > { %1439 = sst [smem:[#allocation16_spill]] %s1176_s29  ;;  %s1185_s5 = sand.u32 1, %s1070_s17  }
  0x18   : > { %s763_s6 = sshll.u32 %s1185_s5, 3  ;;  %s786_s7 = sshll.u32 %s1078_s19, 7 }
  0x19   : > { %p1191_p0 = pnand %p818_p13, %p1159_p4  ;;  %s236_s9 = sand.u32 1, %s1082_s20  }
  0x1a   : > { %s1442_s1 = sld [smem:[#allocation17_spill]]  ;;  %s240_s13 = scalar_lea.vmem [#allocation5], %s763_s6 }
  0x1b   : > { %s251_s14 = sshll.u32 %s240_s13, 4  ;;  %p772_p1 = scmp.ge.s32.totalorder %s1082_s20, 1  ;;  %s252_s14 = int_to_ptr.vmem [resolvable:$true] %s251_s14 }
  0x1c   : > { %p278_p2 = scmp.lt.s32.totalorder %s1082_s20, 3  ;;  %s1201_s22 = scalar_lea.sflag [#allocation6], %s236_s9 }
  0x1d   : > { %p886_p3 = pneg %p1191_p0  ;;  %s897_s24 = scalar_lea.vmem %s252_s14, 128 }
  0x1e   : > { %p898_p4 = scmp.ne.s32.totalorder %s252_s14, %s897_s24  ;;  %s1084_s25 = smov [#allocation5]  }
  0x1f   : > { %s902_s26 = sshll.u32 %s1084_s25, 4  ;;  %s903_s26 = int_to_ptr.vmem [resolvable:$false] %s902_s26 }
  0x20   : > { %s249_s12 = scalar_lea.hbm %s1442_s1, %s786_s7  ;;  %p900_p5 = pnand %p898_p4, %p886_p3 }
  0x21   : > { %s904_s10 = scalar_lea.vmem %s903_s26, 256  ;;  %p905_p7 = scmp.lt.s32.totalorder %s252_s14, %s903_s26 }
  0x22   : > { %p901_p6 = pneg %p900_p5  ;;  %p906_p10 = scmp.lt.s32.totalorder %s904_s10, %s897_s24 }
  0x24   : > { %p907_p13 = por %p906_p10, %p905_p7 }
  0x26   : > { %p908_p12 = pnand %p907_p13, %p901_p6 }
  0x28   : > { %911 = shalt.err (!%p908_p12)
}
  0x29   : > { %807 = dma.hbm_to_vmem [thread:$0]  (!%p1191_p0), %s249_s12, 128, %s252_s14, %s1201_s22  }
  0x2a   : > { %p1215_p4 = pnand %p772_p1, %p278_p2  ;;  %s227_s24 = scalar_lea.hbm %s1428_s0, %s786_s7 }
  0x2b   : > { %s218_s25 = scalar_lea.vmem [#allocation2], %s763_s6  ;;  %s769_s10 = sshll.u32 %s1185_s5, 1 }
  0x2c   : > { %s229_s26 = sshll.u32 %s218_s25, 4  ;;  %s215_s1 = scalar_lea.sflag [#allocation3], %s1185_s5  ;;  %s230_s26 = int_to_ptr.vmem [resolvable:$true] %s229_s26 }
  0x2d   : > { %s925_s23 = scalar_lea.vmem %s230_s26, 128  ;;  %s1085_s12 = smov [#allocation2]  }
  0x2e   : > { %p926_p12 = scmp.ne.s32.totalorder %s230_s26, %s925_s23  ;;  %s930_s14 = sshll.u32 %s1085_s12, 4  ;;  %s931_s14 = int_to_ptr.vmem [resolvable:$false] %s930_s14 }
  0x2f   : > { %s932_s29 = scalar_lea.vmem %s931_s14, 256  ;;  %p933_p1 = scmp.lt.s32.totalorder %s230_s26, %s931_s14 }
  0x30   : > { %p928_p5 = pnand %p926_p12, %p886_p3  ;;  %p934_p2 = scmp.lt.s32.totalorder %s932_s29, %s925_s23 }
  0x32   : > { %p929_p6 = pneg %p928_p5  ;;  %p935_p7 = por %p934_p2, %p933_p1 }
  0x34   : > { %p936_p10 = pnand %p935_p7, %p929_p6 }
  0x36   : > { %939 = shalt.err (!%p936_p10)
}
  0x37   : > { %804 = dma.hbm_to_vmem [thread:$0]  (!%p1191_p0), %s227_s24, 128, %s230_s26, %s215_s1  }
  0x38   : > { %s788_s5 = sshll.u32 %s1078_s19, 5  ;;  %s262_s6 = scalar_lea.vmem [#allocation7], %s769_s10 }
  0x39   : > { %s273_s7 = sshll.u32 %s262_s6, 4  ;;  %s271_s25 = scalar_lea.hbm %s1430_s2, %s788_s5  ;;  %s274_s7 = int_to_ptr.vmem [resolvable:$true] %s273_s7 }
  0x3a   : > { %s953_s12 = scalar_lea.vmem %s274_s7, 32  ;;  %s1086_s23 = smov [#allocation7]  }
  0x3b   : > { %p954_p13 = scmp.ne.s32.totalorder %s274_s7, %s953_s12  ;;  %s958_s29 = sshll.u32 %s1086_s23, 4  ;;  %s959_s29 = int_to_ptr.vmem [resolvable:$false] %s958_s29 }
  0x3c   : > { %s960_s14 = scalar_lea.vmem %s959_s29, 64  ;;  %p961_p6 = scmp.lt.s32.totalorder %s274_s7, %s959_s29 }
  0x3d   : > { %p956_p12 = pnand %p954_p13, %p886_p3  ;;  %p962_p1 = scmp.lt.s32.totalorder %s960_s14, %s953_s12 }
  0x3f   : > { %p957_p5 = pneg %p956_p12  ;;  %p963_p2 = por %p962_p1, %p961_p6 }
  0x41   : > { %p964_p7 = pnand %p963_p2, %p957_p5 }
  0x43   : > { %967 = shalt.err (!%p964_p7)
}
  0x44   : > { %810 = dma.hbm_to_vmem [thread:$0]  (!%p1191_p0), %s271_s25, 32, %s274_s7, %s1201_s22  }
  0x45   : > { %282 = sbr.rel (%p1215_p4) target bundleno = 191 (0xbf), region = 32  ;;  %s1242_s1 = sand.u32 (!%p1215_p4), 1, %s1066_s16  }
  0x46   : > { %s773_s24 = sshll.u32 (!%p1215_p4), %s1242_s1, 3  ;;  %s285_s26 = scalar_lea.sflag (!%p1215_p4), [#allocation3], %s1242_s1 }
  0x47   : > { %s288_s10 = scalar_lea.vmem (!%p1215_p4), [#allocation2], %s773_s24 }
  0x4a   : > { %1045 = dma.done.wait (%p1167_p8), %s285_s26, 128  }
  0x4b   : > { %1047 = vsyncadd (%p1167_p8), %s285_s26, 4294967168  ;;  %s293_s8 = sand.u32 1, %s1147_s21   ;;  %s297_s9 = scalar_lea.vmem [#allocation5], %s773_s24 }
  0x4c   : > { %s294_s22 = scalar_lea.sflag [#allocation6], %s293_s8 }
  0x4d   : > { %1049 = dma.done.wait (%p1167_p8), %s294_s22, 160  }
  0x4e   : > { %1051 = vsyncadd (%p1167_p8), %s294_s22, 4294967136  ;;  %s775_s5 = sshll.u32 %s1242_s1, 1  ;;  %v360_v0 = vlaneseq  ;;  %v1087_v2 = vmov 0.0   ;;  %vm386_vm1 = vcmask 1043456   ;;  %v1271_v3 = vld [vmem:[%s288_s10] sm:$0xff]  ;;  %v1279_v6 = vld [vmem:[%s297_s9] sm:$0xff] }
  0x4f   : > { %s1261_s6 = scalar_lea.vmem [#allocation8], %s775_s5  ;;  %s1266_s21 = scalar_lea.vmem [#allocation9], %s775_s5  ;;  %v1275_v4 = vcombine.high %v1271_v3, %v1271_v3  ;;  %v401_v5 = vsel %vm386_vm1, %v1271_v3, -inf  ;;  %v471_v10 = vsel %vm386_vm1, %v1279_v6, -inf  ;;  %v1287_v12 = vcombine.high %v1279_v6, %v1279_v6 }
  0x50   : > { %vm1257_vm0 = vcmp.lt.s32.totalorder %v360_v0, 256  ;;  %v402_v7 = vrot.slane %v401_v5, 4  ;;  %v472_v15 = vrot.slane %v471_v10, 4  ;;  %s306_s27 = scalar_lea.vmem [#allocation7], %s775_s5  ;;  %s789_s7 = sshll.u32 %s1074_s18, 5 }
  0x51   : > { %364 = vst.msk [vmem:[%s1261_s6] sm:$0x3] %vm1257_vm0, %v1087_v2  ;;  %365 = vst.msk [vmem:[%s1266_s21] sm:$0x3] %vm1257_vm0, %v1087_v2  ;;  %v408_v8 = vsel %vm386_vm1, %v1275_v4, -inf  ;;  %v478_v20 = vsel %vm386_vm1, %v1287_v12, -inf  ;;  %s1308_s12 = scalar_lea.hbm %s1432_s4, %s789_s7 }
  0x52   : > { %v409_v9 = vrot.slane %v408_v8, 4  ;;  %v403_v11 = vmax.f32 %v401_v5, %v402_v7  ;;  %v1289_v16 = vld [vmem:[%s306_s27] sm:$0x3]  ;;  %v473_v19 = vmax.f32 %v471_v10, %v472_v15  ;;  %v479_v24 = vrot.slane %v478_v20, 4  ;;  %s587_s11 = sshll.u32 %s1266_s21, 4  ;;  %s555_s23 = scalar_lea.sflag [#allocation10], %s1242_s1  ;;  %s1310_s11 = int_to_ptr.vmem [resolvable:$true] %s587_s11 }
  0x53   : > { %vm367_vm2 = vcmp.ne.s32.totalorder %v1289_v16, 4294967295  ;;  %s968_s29 = scalar_lea.vmem %s1310_s11, 32  ;;  %s1088_s14 = smov [#allocation9]  }
  0x54   : > { %v410_v13 = vmax.f32 %v408_v8, %v409_v9  ;;  %v404_v14 = vrot.slane %v403_v11, 2  ;;  %v474_v23 = vrot.slane %v473_v19, 2  ;;  %v546_v26 = vsel %vm367_vm2, 1.0, %v1087_v2  ;;  %p969_p8 = scmp.ne.s32.totalorder %s1310_s11, %s968_s29  ;;  %s972_s24 = sshll.u32 %s1088_s14, 4  ;;  %s973_s24 = int_to_ptr.vmem [resolvable:$false] %s972_s24 }
  0x55   : > { %v480_v30 = vmax.f32 %v478_v20, %v479_v24  ;;  %s974_s26 = scalar_lea.vmem %s973_s24, 64  ;;  %p975_p4 = scmp.lt.s32.totalorder %s1310_s11, %s973_s24 }
  0x56   : > { %v411_v17 = vrot.slane %v410_v13, 2  ;;  %v405_v18 = vmax.f32 %v403_v11, %v404_v14  ;;  %v475_v29 = vmax.f32 %v473_v19, %v474_v23  ;;  %p970_p0 = pnand %p969_p8, %p1171_p9  ;;  %p976_p10 = scmp.lt.s32.totalorder %s974_s26, %s968_s29 }
  0x57   : > { %v481_v33 = vrot.slane %v480_v30, 2 }
  0x58   : > { %v412_v21 = vmax.f32 %v410_v13, %v411_v17  ;;  %v406_v22 = vrot.slane %v405_v18, 1  ;;  %v545_v27 = vld [vmem:[%s1266_s21] sm:$0x3]  ;;  %v476_v32 = vrot.slane %v475_v29, 1  ;;  %p971_p3 = pneg %p970_p0  ;;  %p977_p13 = por %p976_p10, %p975_p4 }
  0x59   : > { %v547_v34 = vadd.f32 %v546_v26, %v545_v27  ;;  %v482_v36 = vmax.f32 %v480_v30, %v481_v33 }
  0x5a   : > { %v413_v25 = vrot.slane %v412_v21, 1  ;;  %v1299_v28 = vmax.f32 %v405_v18, %v406_v22  ;;  %p978_p12 = pnand %p977_p13, %p971_p3 }
  0x5b   : > { %548 = vst.msk [vmem:[%s1266_s21] sm:$0x3] %vm1257_vm0, %v547_v34 }
  0x5c   : > { %v1301_v31 = vmax.f32 %v412_v21, %v413_v25 }
  0x5e   : > { %v417_v35 = vcombine.low %v1299_v28, %v1301_v31 }
  0x60   : > { %v419_v37 = vsub.f32 %v1271_v3, %v417_v35 }
  0x61   : > { %981 = shalt.err (!%p978_p12)
}
  0x62   : > { %s982_s10 = scalar_lea.hbm %s1308_s12, 32  ;;  %s986_s9 = scalar_lea.hbm %s1432_s4, 64 }
  0x63   : > { %p983_p5 = scmp.ne.s32.totalorder %s1308_s12, %s982_s10  ;;  %p987_p2 = scmp.lt.s32.totalorder %s1308_s12, %s1432_s4 }
  0x64   : > { %p988_p7 = scmp.lt.s32.totalorder %s986_s9, %s982_s10 }
  0x65   : > { %p984_p6 = pnand %p983_p5, %p1171_p9 }
  0x66   : > { %p989_p8 = por %p988_p7, %p987_p2 }
  0x67   : > { %p985_p1 = pneg %p984_p6 }
  0x69   : > { %p990_p0 = pnand %p989_p8, %p985_p1 }
  0x6b   : > { %993 = shalt.err (!%p990_p0)
}
  0x6c   : > { %798 = dma.vmem_to_hbm [thread:$0]  (%p1171_p9), %s1310_s11, 32, %s1308_s12, %s555_s23   ;;  %v1339_v38 = vmax.f32 %v475_v29, %v476_v32  ;;  %v483_v39 = vrot.slane %v482_v36, 1  ;;  %v420_v40 = vmul.f32 1.442695, %v419_v37  ;;  %v1344_v42 = vshrl.u32 %v360_v0, 7 }
  0x6d   : > { %s571_s27 = sshll.u32 %s1261_s6, 4  ;;  %s569_s25 = scalar_lea.hbm %s1431_s3, %s789_s7  ;;  %s572_s27 = int_to_ptr.vmem [resolvable:$true] %s571_s27 }
  0x6e   : > { %v1341_v41 = vmax.f32 %v482_v36, %v483_v39  ;;  %872 = vpow2.f32 %v420_v40  ;;  %v372_v45 = vsub.s32 0, %v1344_v42  ;;  %v376_v47 = vsub.s32 1, %v1344_v42  ;;  %s550_s12 = scalar_lea.sflag [#allocation4], %s1242_s1  ;;  %s994_s23 = scalar_lea.vmem %s572_s27, 32 }
  0x6f   : > { %p995_p3 = scmp.ne.s32.totalorder %s572_s27, %s994_s23  ;;  %s1090_s29 = smov [#allocation8]  }
  0x70   : > { %v487_v43 = vcombine.low %v1339_v38, %v1341_v41  ;;  %v373_v48 = vrot.slane %v1289_v16, %v372_v45  ;;  %v377_v49 = vrot.slane %v1289_v16, %v376_v47  ;;  %s998_s14 = sshll.u32 %s1090_s29, 4  ;;  %s999_s14 = int_to_ptr.vmem [resolvable:$false] %s998_s14 }
  0x71   : > { %p996_p4 = pnand %p995_p3, %p1171_p9  ;;  %s1000_s24 = scalar_lea.vmem %s999_s14, 64 }
  0x72   : > { %v489_v44 = vsub.f32 %v1279_v6, %v487_v43  ;;  %vm378_vm3 = vcmp.eq.s32.totalorder %v1344_v42, %v373_v48  ;;  %vm379_vm4 = vcmp.eq.s32.totalorder %v1344_v42, %v377_v49  ;;  %p1001_p13 = scmp.lt.s32.totalorder %s572_s27, %s999_s14  ;;  %p1002_p12 = scmp.lt.s32.totalorder %s1000_s24, %s994_s23 }
  0x73   : > { %v384_v54 = vsel %vm378_vm3, %v1271_v3, 0.0  ;;  %v385_v56 = vsel %vm379_vm4, %v1275_v4, 0.0  ;;  %v455_v8 = vsel %vm378_vm3, %v1279_v6, 0.0  ;;  %v456_v14 = vsel %vm379_vm4, %v1287_v12, 0.0  ;;  %p997_p10 = pneg %p996_p4 }
  0x74   : > { %v490_v46 = vmul.f32 1.442695, %v489_v44  ;;  %v387_v59 = vsel %vm386_vm1, %v384_v54, 0.0  ;;  %v394_v63 = vsel %vm386_vm1, %v385_v56, 0.0  ;;  %v457_v20 = vsel %vm386_vm1, %v455_v8, 0.0  ;;  %p1003_p5 = por %p1002_p12, %p1001_p13 }
  0x75   : > { %v388_v7 = vrot.slane %v387_v59, 4  ;;  %v395_v13 = vrot.slane %v394_v63, 4  ;;  %v464_v24 = vsel %vm386_vm1, %v456_v14, 0.0  ;;  %v458_v26 = vrot.slane %v457_v20, 4 }
  0x76   : > { %874 = vpow2.f32 %v490_v46  ;;  %v465_v12 = vrot.slane %v464_v24, 4  ;;  %p1004_p6 = pnand %p1003_p5, %p997_p10 }
  0x77   : > { %v389_v21 = vadd.f32 %v388_v7, %v387_v59  ;;  %v396_v25 = vadd.f32 %v395_v13, %v394_v63  ;;  %v459_v35 = vadd.f32 %v458_v26, %v457_v20 }
  0x78   : > { %v466_v40 = vadd.f32 %v465_v12, %v464_v24 }
  0x79   : > { %v390_v30 = vrot.slane %v389_v21, 2  ;;  %v397_v34 = vrot.slane %v396_v25, 2  ;;  %v460_v45 = vrot.slane %v459_v35, 2 }
  0x7a   : > { %v467_v47 = vrot.slane %v466_v40, 2 }
  0x7b   : > { %v873_v50 = vpop.eup %872  ;;  %v391_v39 = vadd.f32 %v390_v30, %v389_v21  ;;  %v398_v44 = vadd.f32 %v397_v34, %v396_v25  ;;  %v519_v21 = vld [vmem:[%s1261_s6] sm:$0x3] }
  0x7c   : > { %v423_v51 = vcombine.high %v873_v50, %v873_v50  ;;  %v425_v52 = vsel %vm386_vm1, %v873_v50, 0.0  ;;  %v461_v50 = vadd.f32 %v460_v45, %v459_v35  ;;  %v468_v54 = vadd.f32 %v467_v47, %v466_v40 }
  0x7d   : > { %v426_v53 = vrot.slane %v425_v52, 4  ;;  %v392_v46 = vrot.slane %v391_v39, 1  ;;  %v399_v49 = vrot.slane %v398_v44, 1 }
  0x7e   : > { %v432_v55 = vsel %vm386_vm1, %v423_v51, 0.0 }
  0x7f   : > { %v427_v57 = vadd.f32 %v426_v53, %v425_v52  ;;  %v433_v58 = vrot.slane %v432_v55, 4  ;;  %v393_v53 = vadd.f32 %v392_v46, %v391_v39 }
  0x81   : > { %v428_v60 = vrot.slane %v427_v57, 2  ;;  %v434_v61 = vadd.f32 %v433_v58, %v432_v55  ;;  %v462_v58 = vrot.slane %v461_v50, 1 }
  0x83   : > { %v875_v62 = vpop.eup %874  ;;  %v429_v0 = vadd.f32 %v428_v60, %v427_v57  ;;  %v435_v2 = vrot.slane %v434_v61, 2  ;;  %v400_v57 = vadd.f32 %v399_v49, %v398_v44 }
  0x84   : > { %v493_v5 = vcombine.high %v875_v62, %v875_v62  ;;  %v495_v3 = vsel %vm386_vm1, %v875_v62, 0.0 }
  0x85   : > { %v496_v4 = vrot.slane %v495_v3, 4  ;;  %v430_v9 = vrot.slane %v429_v0, 1  ;;  %v436_v10 = vadd.f32 %v435_v2, %v434_v61  ;;  %v469_v61 = vrot.slane %v468_v54, 1 }
  0x86   : > { %v502_v11 = vsel %vm386_vm1, %v493_v5, 0.0  ;;  %v1089_v5 = vmov 1966171168  }
  0x87   : > { %v497_v15 = vadd.f32 %v496_v4, %v495_v3  ;;  %v503_v17 = vrot.slane %v502_v11, 4  ;;  %v431_v18 = vadd.f32 %v430_v9, %v429_v0  ;;  %v437_v19 = vrot.slane %v436_v10, 1 }
  0x88   : > { %v463_v0 = vadd.f32 %v462_v58, %v461_v50  ;;  %v524_v3 = vunpack.c.l.s4 %v1089_v5  ;;  %v470_v4 = vadd.f32 %v469_v61, %v468_v54 }
  0x89   : > { %v498_v22 = vrot.slane %v497_v15, 2  ;;  %v504_v23 = vadd.f32 %v503_v17, %v502_v11  ;;  %v438_v6 = vadd.f32 %v437_v19, %v436_v10  ;;  %876 = vlog2.f32 %v431_v18 }
  0x8a   : > { %v525_v13 = vunpack.c.0.s8 %v524_v3 }
  0x8b   : > { %v499_v27 = vadd.f32 %v498_v22, %v497_v15  ;;  %v505_v29 = vrot.slane %v504_v23, 2  ;;  %878 = vlog2.f32 %v438_v6 }
  0x8c   : > { %v528_v18 = vsub.s32 %v525_v13, %v1344_v42 }
  0x8d   : > { %v500_v32 = vrot.slane %v499_v27, 1  ;;  %v506_v33 = vadd.f32 %v505_v29, %v504_v23 }
  0x8f   : > { %v501_v36 = vadd.f32 %v500_v32, %v499_v27  ;;  %v507_v37 = vrot.slane %v506_v33, 1 }
  0x91   : > { %v508_v43 = vadd.f32 %v507_v37, %v506_v33  ;;  %880 = vlog2.f32 %v501_v36 }
  0x93   : > { %882 = vlog2.f32 %v508_v43 }
  0x96   : > { %v877_v48 = vpop.eup %876 }
  0x97   : > { %v440_v51 = vmul.f32 0.6931472, %v877_v48 }
  0x98   : > { %v879_v52 = vpop.eup %878 }
  0x99   : > { %v442_v55 = vmul.f32 0.6931472, %v879_v52  ;;  %v443_v56 = vadd.f32 %v440_v51, %v1299_v28 }
  0x9b   : > { %v444_v59 = vadd.f32 %v442_v55, %v1301_v31  ;;  %v445_v60 = vsub.f32 %v443_v56, %v393_v53 }
  0x9d   : > { %v446_v63 = vsub.f32 %v444_v59, %v400_v57  ;;  %v447_v8 = vmul.f32 0.4, %v445_v60 }
  0x9e   : > { %v881_v62 = vpop.eup %880 }
  0x9f   : > { %v510_v2 = vmul.f32 0.6931472, %v881_v62  ;;  %v448_v10 = vmul.f32 0.4, %v446_v63 }
  0xa0   : > { %v883_v7 = vpop.eup %882 }
  0xa1   : > { %v512_v9 = vmul.f32 0.6931472, %v883_v7  ;;  %v513_v28 = vadd.f32 %v510_v2, %v1339_v38 }
  0xa3   : > { %v514_v31 = vadd.f32 %v512_v9, %v1341_v41  ;;  %v515_v11 = vsub.f32 %v513_v28, %v463_v0 }
  0xa5   : > { %v516_v14 = vsub.f32 %v514_v31, %v470_v4  ;;  %v517_v15 = vadd.f32 %v515_v11, %v447_v8 }
  0xa7   : > { %v518_v17 = vadd.f32 %v516_v14, %v448_v10 }
  0xa9   : > { %v522_v19 = vcombine.low %v517_v15, %v518_v17 }
  0xab   : > { %v529_v20 = vrot.slane %v522_v19, %v528_v18 }
  0xad   : > { %v536_v22 = vrot.slane %v529_v20, %v528_v18 }
  0xaf   : > { %v538_v38 = vsel %vm367_vm2, %v536_v22, 0.0 }
  0xb0   : > { %v539_v23 = vadd.f32 %v538_v38, %v519_v21 }
  0xb2   : > { %544 = vst.msk [vmem:[%s1261_s6] sm:$0x3] %vm1257_vm0, %v539_v23 }
  0xb3   : > { %1007 = shalt.err (!%p1004_p6)
}
  0xb4   : > { %s1008_s18 = scalar_lea.hbm %s569_s25, 32  ;;  %s1012_s7 = scalar_lea.hbm %s1431_s3, 64 }
  0xb5   : > { %p1009_p1 = scmp.ne.s32.totalorder %s569_s25, %s1008_s18  ;;  %p1013_p8 = scmp.lt.s32.totalorder %s569_s25, %s1431_s3 }
  0xb6   : > { %p1014_p0 = scmp.lt.s32.totalorder %s1012_s7, %s1008_s18 }
  0xb7   : > { %p1010_p2 = pnand %p1009_p1, %p1171_p9 }
  0xb8   : > { %p1015_p3 = por %p1014_p0, %p1013_p8 }
  0xb9   : > { %p1011_p7 = pneg %p1010_p2 }
  0xbb   : > { %p1016_p4 = pnand %p1015_p3, %p1011_p7 }
  0xbd   : > { %1019 = shalt.err (!%p1016_p4)
}
  0xbe   : > { %797 = dma.vmem_to_hbm [thread:$0]  (%p1171_p9), %s572_s27, 32, %s569_s25, %s550_s12  }
  0xbf PF: > { %s599_s8 = sand.u32 1, %s1062_s15   ;;  %p1446_p10 = scmp.ge.s32.totalorder %s1082_s20, 2 }
  0xc0   : > { %s600_s22 = scalar_lea.sflag [#allocation4], %s599_s8 }
  0xc1   : > { %p812_p13 = pnand %p1446_p10, %p1178_p11 }
  0xc3   : > { %p813_p12 = pneg %p812_p13 }
  0xc5   : > { %1053 = dma.done.wait (%p813_p12), %s600_s22, 32  }
  0xc6   : > { %1055 = vsyncadd (%p813_p12), %s600_s22, 4294967264  ;;  %s609_s9 = scalar_lea.sflag [#allocation10], %s599_s8 }
  0xc7   : > { %1057 = dma.done.wait (%p813_p12), %s609_s9, 32  }
  0xc8   : > { %1059 = vsyncadd (%p813_p12), %s609_s9, 4294967264  ;;  %s27_s20 = sadd.s32 1, %s1082_s20   ;;  %s1447_s28 = sld [smem:[#allocation16_spill]] }
  0xc9   : > { %p24_p5 = scmp.ge.s32.totalorder %s27_s20, 4   ;;  %s1448_s5 = sld [smem:[#allocation15_spill]] }
  0xca   : > { %s1449_s15 = smov %s1066_s16  ;;  %s1450_s16 = smov %s1070_s17 }
  0xcb   : > { %s1452_s18 = smov %s1078_s19  ;;  %26 = sbr.rel (!%p24_p5) target bundleno = 12 (0xc), region = 122 }
  0xce   : > { %s1451_s17 = smov %s1447_s28 }
  0xcf   : > { %s1453_s19 = smov %s1448_s5 }
  0xd0   :  { %614 = vsyncpa [#allocation3], 1 }
  0xd1   :  { %616 = vsyncpa [#allocation3 + $0x1], 1 }
  0xd2   :  { %617 = vsyncpa [#allocation6], 1 }
  0xd3   :  { %619 = vsyncpa [#allocation6 + $0x1], 1 }
  0xd4   :  { %620 = vsyncpa [#allocation4], 1 }
  0xd5   :  { %622 = vsyncpa [#allocation4 + $0x1], 1 }
  0xd6   :  { %623 = vsyncpa [#allocation10], 1 }
  0xd7   :  { %625 = vsyncpa [#allocation10 + $0x1], 1 }

</bundles_post_ra>
